<compile_context>
chip_gen: v6e
topology: v6e:2x2x1
jax: 0.10.0
libtpu: 0.0.40
codegen_flags: <defaults>
</compile_context>

<pallas_src>
import functools

import numpy as np
import jax
import jax.numpy as jnp
from jax.experimental import pallas as pl
from jax.experimental.pallas import tpu as pltpu

# home_robot MapConstants.EXPLORED_MAP
EXPLORED_MAP = 1


def _disk(radius: int) -> np.ndarray:
    """Equivalent of skimage.morphology.disk(radius), float32."""
    y, x = np.mgrid[-radius:radius + 1, -radius:radius + 1]
    return (x * x + y * y <= radius * radius).astype(np.float32)


DILATE_EXPLORED_KERNEL = _disk(10)   # (21, 21), 317 nonzero taps
SELECT_BORDER_KERNEL = _disk(1)      # (3, 3),   5 nonzero taps (cross)
R1 = DILATE_EXPLORED_KERNEL.shape[-1] // 2   # conv padding = 10
R2 = SELECT_BORDER_KERNEL.shape[-1] // 2     # conv padding = 1


def _band_groups(kernel: np.ndarray):
    """Decompose a disk-like 0/1 kernel into (half_width, |dy|_lo, |dy|_hi) groups so
    that conv2d(x, K, zero-pad) == sum_g V_g @ (x @ B_{w_g}), with
    B_w[t, j] = (|t-j| <= w) and V_g[i, s] = (lo_g <= |s-i| <= hi_g)."""
    kh, kw = kernel.shape
    assert kh == kw and kh % 2 == 1
    assert np.array_equal(kernel, kernel[::-1, :]), "kernel must be symmetric in dy"
    ry, rx = kh // 2, kw // 2
    by_width = {}
    for di in range(kh):
        nz = np.nonzero(kernel[di])[0]
        if nz.size == 0:
            continue
        assert nz[-1] - nz[0] + 1 == nz.size, "row support must be contiguous"
        assert nz[0] + nz[-1] == 2 * rx, "row support must be centred"
        by_width.setdefault(int(nz[-1] - rx), set()).add(abs(di - ry))
    groups = []
    for w, ys in sorted(by_width.items()):
        ys = sorted(ys)
        assert ys == list(range(ys[0], ys[-1] + 1)), "|dy| set must be contiguous"
        groups.append((w, ys[0], ys[-1]))
    return groups


@functools.lru_cache(maxsize=None)
def _plan_and_bands(M: int):
    """Static matmul plan + stacked band-matrix constants for map size M.

    Returns (plans, bands):
      plans = (plan_disk10, plan_disk1); each plan is a tuple of (h_idx, v_idx)
              pairs, where None means the band is the identity (matmul skipped).
      bands = bf16 array (NB, M, M) of the band matrices (0/1, exact in bf16).
    """
    d = np.abs(np.arange(M)[:, None] - np.arange(M)[None, :])
    mats = []

    def add(mat):
        mats.append(np.asarray(mat, np.float32))
        return len(mats) - 1

    plans = []
    for kern in (DILATE_EXPLORED_KERNEL, SELECT_BORDER_KERNEL):
        plan = []
        for w, lo, hi in _band_groups(kern):
            h_idx = None if w == 0 else add(d <= w)
            v_idx = None if (lo == 0 and hi == 0) else add((d >= lo) & (d <= hi))
            plan.append((h_idx, v_idx))
        plans.append(tuple(plan))

    bands = jnp.asarray(np.stack(mats), dtype=jnp.bfloat16)
    return tuple(plans), bands


def _banded_conv(x16, bands_ref, plan):
    """conv2d(x, disk kernel, zero-pad) as banded MXU matmuls with f32 accumulation."""
    M = x16.shape[-1]
    acc = jnp.zeros((M, M), jnp.float32)
    for h_idx, v_idx in plan:
        if h_idx is None:                       # horizontal band == identity
            h = x16
        else:
            h = jnp.dot(x16, bands_ref[h_idx], preferred_element_type=jnp.float32)
        if v_idx is None:                       # vertical band == identity
            acc = acc + h.astype(jnp.float32)
        else:
            acc = acc + jnp.dot(bands_ref[v_idx], h.astype(jnp.bfloat16),
                                preferred_element_type=jnp.float32)
    return acc


def _frontier_kernel(plans, explored_ref, bands_ref, out_ref):
    # explored_ref: (1, M, M)  EXPLORED_MAP channel of one batch element (native dtype)
    # bands_ref   : (NB, M, M) bf16 constant band matrices (fetched once per core)
    # out_ref     : (1, M, M)  f32 goal map
    plan_erode, plan_dilate = plans

    # 1 - frontier == (explored != 0); values 0/1 are exact in bf16.
    g16 = (explored_ref[0] != 0).astype(jnp.float32).astype(jnp.bfloat16)

    # binary_erosion(frontier, disk(10)) = 1 - min(conv2d(1 - frontier, disk10), 1)
    c1 = _banded_conv(g16, bands_ref, plan_erode)        # non-negative integer counts
    eroded = 1.0 - jnp.minimum(c1, 1.0)                  # exact {0, 1}

    # binary_dilation(eroded, disk(1)) - eroded
    c2 = _banded_conv(eroded.astype(jnp.bfloat16), bands_ref, plan_dilate)
    out_ref[0] = jnp.minimum(c2, 1.0) - eroded


def frontier_exploration_policy(map_features: jax.Array) -> jax.Array:
    """map_features: (B, C, M, M) NCHW -> goal_map: (B, 1, M, M) float32."""
    B, C, M, _ = map_features.shape
    assert C > EXPLORED_MAP

    plans, bands = _plan_and_bands(M)
    NB = bands.shape[0]

    # Only the EXPLORED_MAP channel is needed; slice it (native dtype, no full cast).
    explored = map_features[:, EXPLORED_MAP]             # (B, M, M)

    n_matmuls = sum(int(i is not None) for plan in plans for pair in plan for i in pair)
    cost = pl.CostEstimate(
        flops=int(2 * B * n_matmuls * M * M * M),
        transcendentals=0,
        bytes_accessed=int(B * M * M * (explored.dtype.itemsize + 4) + NB * M * M * 2),
    )

    goal = pl.pallas_call(
        functools.partial(_frontier_kernel, plans),
        out_shape=jax.ShapeDtypeStruct((B, M, M), jnp.float32),
        grid_spec=pltpu.PrefetchScalarGridSpec(
            num_scalar_prefetch=0,
            grid=(B,),
            in_specs=[
                pl.BlockSpec((1, M, M), lambda b: (b, 0, 0)),
                # Constant block index -> band stack DMA'd once, not per grid step.
                pl.BlockSpec((NB, M, M), lambda b: (0, 0, 0)),
            ],
            out_specs=pl.BlockSpec((1, M, M), lambda b: (b, 0, 0)),
        ),
        compiler_params=pltpu.CompilerParams(dimension_semantics=("parallel",)),
        cost_estimate=cost,
    )(explored, bands)

    return goal[:, None, :, :]                           # (B, 1, M, M)


def _reference(map_features: jax.Array) -> jax.Array:
    """Pure-JAX reference mirroring the torch forward exactly."""
    k1 = jnp.asarray(DILATE_EXPLORED_KERNEL)[None, None]
    k2 = jnp.asarray(SELECT_BORDER_KERNEL)[None, None]

    def conv(x, k, pad):
        return jax.lax.conv_general_dilated(
            x, k, window_strides=(1, 1), padding=[(pad, pad), (pad, pad)],
            dimension_numbers=("NCHW", "OIHW", "NCHW"))

    frontier = (map_features[:, EXPLORED_MAP:EXPLORED_MAP + 1] == 0).astype(jnp.float32)
    eroded = 1.0 - jnp.clip(conv(1.0 - frontier, k1, R1), 0.0, 1.0)
    dilated = jnp.clip(conv(eroded, k2, R2), 0.0, 1.0)
    return dilated - eroded


if __name__ == "__main__":
    key = jax.random.PRNGKey(0)
    k0, k1 = jax.random.split(key)

    # Main small test: batch=2, 8 + 4 sem categories, 16x16 map.
    # Sparse explored pixels -> non-trivial frontier/erosion/dilation structure.
    B, C, M = 2, 8 + 4, 16
    map_features = jax.random.bernoulli(k0, 0.05, (B, C, M, M)).astype(jnp.float32)

    goal_map = jax.block_until_ready(frontier_exploration_policy(map_features))
    ref = _reference(map_features)
    assert goal_map.shape == (B, 1, M, M)
    assert jnp.allclose(goal_map, ref), "Pallas kernel mismatch vs JAX reference (M=16)"

    # Second shape to exercise the banded decomposition at a larger map size.
    B2, C2, M2 = 1, 9, 40
    mf2 = jax.random.bernoulli(k1, 0.02, (B2, C2, M2, M2)).astype(jnp.float32)
    goal2 = jax.block_until_ready(frontier_exploration_policy(mf2))
    assert jnp.allclose(goal2, _reference(mf2)), "Pallas kernel mismatch vs JAX reference (M=40)"

    print("KERNEL_OK")
</pallas_src>

<mosaic_0001>
module attributes {stable_mosaic.version = 11 : i64} {
  func.func @_frontier_kernel(%arg0: i32, %arg1: memref<1x16x16xf32, #tpu.memory_space<vmem>>, %arg2: memref<14x16x16xbf16, #tpu.memory_space<vmem>>, %arg3: memref<1x16x16xf32, #tpu.memory_space<vmem>>) attributes {dimension_semantics = [#tpu.dimension_semantics<parallel>], iteration_bounds = array<i64: 2>, scalar_prefetch = 0 : i64, scratch_operands = 0 : i64, tpu.core_type = #tpu.core_type<tc>, window_params = [{transform_indices = @transform_0, window_bounds = array<i64: 1, 16, 16>}, {pipeline_mode = #tpu.pipeline_mode<synchronous>, transform_indices = @transform_1, window_bounds = array<i64: 14, 16, 16>}, {transform_indices = @transform_2, window_bounds = array<i64: 1, 16, 16>}]} {
    %c0 = arith.constant 0 : index
    %c0_0 = arith.constant 0 : index
    %c0_1 = arith.constant 0 : index
    %0 = vector.load %arg1[%c0, %c0_0, %c0_1] : memref<1x16x16xf32, #tpu.memory_space<vmem>>, vector<1x16x16xf32>
    %1 = vector.shape_cast %0 : vector<1x16x16xf32> to vector<16x16xf32>
    %cst = arith.constant 0.000000e+00 : f32
    %2 = vector.broadcast %cst : f32 to vector<16x16xf32>
    %3 = arith.cmpf one, %1, %2 : vector<16x16xf32>
    %4 = arith.extui %3 : vector<16x16xi1> to vector<16x16xi32>
    %5 = arith.sitofp %4 : vector<16x16xi32> to vector<16x16xf32>
    %6 = arith.truncf %5 : vector<16x16xf32> to vector<16x16xbf16>
    %cst_2 = arith.constant 0.000000e+00 : f32
    %7 = vector.broadcast %cst_2 : f32 to vector<16x16xf32>
    %c0_3 = arith.constant 0 : index
    %c0_4 = arith.constant 0 : index
    %c0_5 = arith.constant 0 : index
    %8 = vector.load %arg2[%c0_3, %c0_4, %c0_5] : memref<14x16x16xbf16, #tpu.memory_space<vmem>>, vector<1x16x16xbf16>
    %9 = vector.shape_cast %8 : vector<1x16x16xbf16> to vector<16x16xbf16>
    %cst_6 = arith.constant dense<0.000000e+00> : vector<16x16xf32>
    %10 = tpu.matmul %9, %6, %cst_6 {dimension_numbers = #tpu.dot_dimension_numbers<[1], [0], [0], [1], [0, 0, 1, 1], [], []>} : vector<16x16xbf16>, vector<16x16xbf16>, vector<16x16xf32> -> vector<16x16xf32>
    %11 = arith.addf %7, %10 : vector<16x16xf32>
    %c1 = arith.constant 1 : index
    %c0_7 = arith.constant 0 : index
    %c0_8 = arith.constant 0 : index
    %12 = vector.load %arg2[%c1, %c0_7, %c0_8] : memref<14x16x16xbf16, #tpu.memory_space<vmem>>, vector<1x16x16xbf16>
    %13 = vector.shape_cast %12 : vector<1x16x16xbf16> to vector<16x16xbf16>
    %cst_9 = arith.constant dense<0.000000e+00> : vector<16x16xf32>
    %14 = tpu.matmul %6, %13, %cst_9 {dimension_numbers = #tpu.dot_dimension_numbers<[1], [0], [0], [1], [0, 0, 1, 1], [], []>} : vector<16x16xbf16>, vector<16x16xbf16>, vector<16x16xf32> -> vector<16x16xf32>
    %c2 = arith.constant 2 : index
    %c0_10 = arith.constant 0 : index
    %c0_11 = arith.constant 0 : index
    %15 = vector.load %arg2[%c2, %c0_10, %c0_11] : memref<14x16x16xbf16, #tpu.memory_space<vmem>>, vector<1x16x16xbf16>
    %16 = vector.shape_cast %15 : vector<1x16x16xbf16> to vector<16x16xbf16>
    %17 = arith.truncf %14 : vector<16x16xf32> to vector<16x16xbf16>
    %cst_12 = arith.constant dense<0.000000e+00> : vector<16x16xf32>
    %18 = tpu.matmul %16, %17, %cst_12 {dimension_numbers = #tpu.dot_dimension_numbers<[1], [0], [0], [1], [0, 0, 1, 1], [], []>} : vector<16x16xbf16>, vector<16x16xbf16>, vector<16x16xf32> -> vector<16x16xf32>
    %19 = arith.addf %11, %18 : vector<16x16xf32>
    %c3 = arith.constant 3 : index
    %c0_13 = arith.constant 0 : index
    %c0_14 = arith.constant 0 : index
    %20 = vector.load %arg2[%c3, %c0_13, %c0_14] : memref<14x16x16xbf16, #tpu.memory_space<vmem>>, vector<1x16x16xbf16>
    %21 = vector.shape_cast %20 : vector<1x16x16xbf16> to vector<16x16xbf16>
    %cst_15 = arith.constant dense<0.000000e+00> : vector<16x16xf32>
    %22 = tpu.matmul %6, %21, %cst_15 {dimension_numbers = #tpu.dot_dimension_numbers<[1], [0], [0], [1], [0, 0, 1, 1], [], []>} : vector<16x16xbf16>, vector<16x16xbf16>, vector<16x16xf32> -> vector<16x16xf32>
    %c4 = arith.constant 4 : index
    %c0_16 = arith.constant 0 : index
    %c0_17 = arith.constant 0 : index
    %23 = vector.load %arg2[%c4, %c0_16, %c0_17] : memref<14x16x16xbf16, #tpu.memory_space<vmem>>, vector<1x16x16xbf16>
    %24 = vector.shape_cast %23 : vector<1x16x16xbf16> to vector<16x16xbf16>
    %25 = arith.truncf %22 : vector<16x16xf32> to vector<16x16xbf16>
    %cst_18 = arith.constant dense<0.000000e+00> : vector<16x16xf32>
    %26 = tpu.matmul %24, %25, %cst_18 {dimension_numbers = #tpu.dot_dimension_numbers<[1], [0], [0], [1], [0, 0, 1, 1], [], []>} : vector<16x16xbf16>, vector<16x16xbf16>, vector<16x16xf32> -> vector<16x16xf32>
    %27 = arith.addf %19, %26 : vector<16x16xf32>
    %c5 = arith.constant 5 : index
    %c0_19 = arith.constant 0 : index
    %c0_20 = arith.constant 0 : index
    %28 = vector.load %arg2[%c5, %c0_19, %c0_20] : memref<14x16x16xbf16, #tpu.memory_space<vmem>>, vector<1x16x16xbf16>
    %29 = vector.shape_cast %28 : vector<1x16x16xbf16> to vector<16x16xbf16>
    %cst_21 = arith.constant dense<0.000000e+00> : vector<16x16xf32>
    %30 = tpu.matmul %6, %29, %cst_21 {dimension_numbers = #tpu.dot_dimension_numbers<[1], [0], [0], [1], [0, 0, 1, 1], [], []>} : vector<16x16xbf16>, vector<16x16xbf16>, vector<16x16xf32> -> vector<16x16xf32>
    %c6 = arith.constant 6 : index
    %c0_22 = arith.constant 0 : index
    %c0_23 = arith.constant 0 : index
    %31 = vector.load %arg2[%c6, %c0_22, %c0_23] : memref<14x16x16xbf16, #tpu.memory_space<vmem>>, vector<1x16x16xbf16>
    %32 = vector.shape_cast %31 : vector<1x16x16xbf16> to vector<16x16xbf16>
    %33 = arith.truncf %30 : vector<16x16xf32> to vector<16x16xbf16>
    %cst_24 = arith.constant dense<0.000000e+00> : vector<16x16xf32>
    %34 = tpu.matmul %32, %33, %cst_24 {dimension_numbers = #tpu.dot_dimension_numbers<[1], [0], [0], [1], [0, 0, 1, 1], [], []>} : vector<16x16xbf16>, vector<16x16xbf16>, vector<16x16xf32> -> vector<16x16xf32>
    %35 = arith.addf %27, %34 : vector<16x16xf32>
    %c7 = arith.constant 7 : index
    %c0_25 = arith.constant 0 : index
    %c0_26 = arith.constant 0 : index
    %36 = vector.load %arg2[%c7, %c0_25, %c0_26] : memref<14x16x16xbf16, #tpu.memory_space<vmem>>, vector<1x16x16xbf16>
    %37 = vector.shape_cast %36 : vector<1x16x16xbf16> to vector<16x16xbf16>
    %cst_27 = arith.constant dense<0.000000e+00> : vector<16x16xf32>
    %38 = tpu.matmul %6, %37, %cst_27 {dimension_numbers = #tpu.dot_dimension_numbers<[1], [0], [0], [1], [0, 0, 1, 1], [], []>} : vector<16x16xbf16>, vector<16x16xbf16>, vector<16x16xf32> -> vector<16x16xf32>
    %c8 = arith.constant 8 : index
    %c0_28 = arith.constant 0 : index
    %c0_29 = arith.constant 0 : index
    %39 = vector.load %arg2[%c8, %c0_28, %c0_29] : memref<14x16x16xbf16, #tpu.memory_space<vmem>>, vector<1x16x16xbf16>
    %40 = vector.shape_cast %39 : vector<1x16x16xbf16> to vector<16x16xbf16>
    %41 = arith.truncf %38 : vector<16x16xf32> to vector<16x16xbf16>
    %cst_30 = arith.constant dense<0.000000e+00> : vector<16x16xf32>
    %42 = tpu.matmul %40, %41, %cst_30 {dimension_numbers = #tpu.dot_dimension_numbers<[1], [0], [0], [1], [0, 0, 1, 1], [], []>} : vector<16x16xbf16>, vector<16x16xbf16>, vector<16x16xf32> -> vector<16x16xf32>
    %43 = arith.addf %35, %42 : vector<16x16xf32>
    %c9 = arith.constant 9 : index
    %c0_31 = arith.constant 0 : index
    %c0_32 = arith.constant 0 : index
    %44 = vector.load %arg2[%c9, %c0_31, %c0_32] : memref<14x16x16xbf16, #tpu.memory_space<vmem>>, vector<1x16x16xbf16>
    %45 = vector.shape_cast %44 : vector<1x16x16xbf16> to vector<16x16xbf16>
    %cst_33 = arith.constant dense<0.000000e+00> : vector<16x16xf32>
    %46 = tpu.matmul %6, %45, %cst_33 {dimension_numbers = #tpu.dot_dimension_numbers<[1], [0], [0], [1], [0, 0, 1, 1], [], []>} : vector<16x16xbf16>, vector<16x16xbf16>, vector<16x16xf32> -> vector<16x16xf32>
    %c10 = arith.constant 10 : index
    %c0_34 = arith.constant 0 : index
    %c0_35 = arith.constant 0 : index
    %47 = vector.load %arg2[%c10, %c0_34, %c0_35] : memref<14x16x16xbf16, #tpu.memory_space<vmem>>, vector<1x16x16xbf16>
    %48 = vector.shape_cast %47 : vector<1x16x16xbf16> to vector<16x16xbf16>
    %49 = arith.truncf %46 : vector<16x16xf32> to vector<16x16xbf16>
    %cst_36 = arith.constant dense<0.000000e+00> : vector<16x16xf32>
    %50 = tpu.matmul %48, %49, %cst_36 {dimension_numbers = #tpu.dot_dimension_numbers<[1], [0], [0], [1], [0, 0, 1, 1], [], []>} : vector<16x16xbf16>, vector<16x16xbf16>, vector<16x16xf32> -> vector<16x16xf32>
    %51 = arith.addf %43, %50 : vector<16x16xf32>
    %c11 = arith.constant 11 : index
    %c0_37 = arith.constant 0 : index
    %c0_38 = arith.constant 0 : index
    %52 = vector.load %arg2[%c11, %c0_37, %c0_38] : memref<14x16x16xbf16, #tpu.memory_space<vmem>>, vector<1x16x16xbf16>
    %53 = vector.shape_cast %52 : vector<1x16x16xbf16> to vector<16x16xbf16>
    %cst_39 = arith.constant dense<0.000000e+00> : vector<16x16xf32>
    %54 = tpu.matmul %6, %53, %cst_39 {dimension_numbers = #tpu.dot_dimension_numbers<[1], [0], [0], [1], [0, 0, 1, 1], [], []>} : vector<16x16xbf16>, vector<16x16xbf16>, vector<16x16xf32> -> vector<16x16xf32>
    %55 = arith.addf %51, %54 : vector<16x16xf32>
    %cst_40 = arith.constant 1.000000e+00 : f32
    %56 = vector.broadcast %cst_40 : f32 to vector<16x16xf32>
    %57 = arith.minimumf %55, %56 : vector<16x16xf32>
    %cst_41 = arith.constant 1.000000e+00 : f32
    %58 = vector.broadcast %cst_41 : f32 to vector<16x16xf32>
    %59 = arith.subf %58, %57 : vector<16x16xf32>
    %60 = arith.truncf %59 : vector<16x16xf32> to vector<16x16xbf16>
    %cst_42 = arith.constant 0.000000e+00 : f32
    %61 = vector.broadcast %cst_42 : f32 to vector<16x16xf32>
    %c12 = arith.constant 12 : index
    %c0_43 = arith.constant 0 : index
    %c0_44 = arith.constant 0 : index
    %62 = vector.load %arg2[%c12, %c0_43, %c0_44] : memref<14x16x16xbf16, #tpu.memory_space<vmem>>, vector<1x16x16xbf16>
    %63 = vector.shape_cast %62 : vector<1x16x16xbf16> to vector<16x16xbf16>
    %cst_45 = arith.constant dense<0.000000e+00> : vector<16x16xf32>
    %64 = tpu.matmul %63, %60, %cst_45 {dimension_numbers = #tpu.dot_dimension_numbers<[1], [0], [0], [1], [0, 0, 1, 1], [], []>} : vector<16x16xbf16>, vector<16x16xbf16>, vector<16x16xf32> -> vector<16x16xf32>
    %65 = arith.addf %61, %64 : vector<16x16xf32>
    %c13 = arith.constant 13 : index
    %c0_46 = arith.constant 0 : index
    %c0_47 = arith.constant 0 : index
    %66 = vector.load %arg2[%c13, %c0_46, %c0_47] : memref<14x16x16xbf16, #tpu.memory_space<vmem>>, vector<1x16x16xbf16>
    %67 = vector.shape_cast %66 : vector<1x16x16xbf16> to vector<16x16xbf16>
    %cst_48 = arith.constant dense<0.000000e+00> : vector<16x16xf32>
    %68 = tpu.matmul %60, %67, %cst_48 {dimension_numbers = #tpu.dot_dimension_numbers<[1], [0], [0], [1], [0, 0, 1, 1], [], []>} : vector<16x16xbf16>, vector<16x16xbf16>, vector<16x16xf32> -> vector<16x16xf32>
    %69 = arith.addf %65, %68 : vector<16x16xf32>
    %cst_49 = arith.constant 1.000000e+00 : f32
    %70 = vector.broadcast %cst_49 : f32 to vector<16x16xf32>
    %71 = arith.minimumf %69, %70 : vector<16x16xf32>
    %72 = arith.subf %71, %59 : vector<16x16xf32>
    %c0_50 = arith.constant 0 : index
    %c0_51 = arith.constant 0 : index
    %c0_52 = arith.constant 0 : index
    %73 = vector.load %arg3[%c0_50, %c0_51, %c0_52] : memref<1x16x16xf32, #tpu.memory_space<vmem>>, vector<1x16x16xf32>
    %74 = vector.shape_cast %73 : vector<1x16x16xf32> to vector<16x16xf32>
    %75 = vector.shape_cast %72 : vector<16x16xf32> to vector<1x16x16xf32>
    tpu.vector_store %arg3[%c0_50, %c0_51, %c0_52], %75 {strides = array<i32>} : memref<1x16x16xf32, #tpu.memory_space<vmem>>, vector<1x16x16xf32>,
    return
  }
  func.func @transform_0(%arg0: i32) -> (i32, i32, i32) {
    %c0_i32 = arith.constant 0 : i32
    %c0_i32_0 = arith.constant 0 : i32
    %c0_i32_1 = arith.constant 0 : i32
    return %arg0, %c0_i32, %c0_i32_0 : i32, i32, i32
  }
  func.func @transform_1(%arg0: i32) -> (i32, i32, i32) {
    %c0_i32 = arith.constant 0 : i32
    %c0_i32_0 = arith.constant 0 : i32
    %c0_i32_1 = arith.constant 0 : i32
    %c0_i32_2 = arith.constant 0 : i32
    return %c0_i32, %c0_i32_0, %c0_i32_1 : i32, i32, i32
  }
  func.func @transform_2(%arg0: i32) -> (i32, i32, i32) {
    %c0_i32 = arith.constant 0 : i32
    %c0_i32_0 = arith.constant 0 : i32
    %c0_i32_1 = arith.constant 0 : i32
    return %arg0, %c0_i32, %c0_i32_0 : i32, i32, i32
  }
}

</mosaic_0001>

<bundles_post_ra>
// kernel: tpu_custom_call.1
= control target key start
LH: loop header
LB: loop body
LE: loop exit
PB: predicated region body
PF: predicated region fallthrough
CT: control target
= control target key end

     0   :  { %7 = vsyncpa [#allocation3], 0  ;;  %s1670_s0 = inlined_call_operand.hbm [shape: f32[2,16,16], index: 0, kind: input, shape index: {}]   ;;  %s1671_s1 = inlined_call_operand.hbm [shape: bf16[14,16,16], index: 1, kind: input, shape index: {}]   ;;  %s1672_s2 = inlined_call_operand.hbm [shape: f32[2,16,16], index: 2, kind: output, shape index: {}]  }
   0x1   :  { %9 = vsyncpa [#allocation3 + $0x1], 0 }
   0x2   :  { %10 = vsyncpa [#allocation6], 0 }
   0x3   :  { %11 = vsyncpa [#allocation4], 0 }
   0x4   :  { %13 = vsyncpa [#allocation4 + $0x1], 0  ;;  %s1423_s9 = smov 0   ;;  %s1425_s10 = smov 0  }
   0x5   :  { %s1427_s11 = smov 0   ;;  %s1429_s12 = smov 0  }
   0x6 LB: > { %s1444_s13 = sadd.s32 4294967295, %s1394_s12   ;;  %s1030_s14 = sadd.s32 4294967294, %s1394_s12   ;;  %s1394_s12 = sphi %s1429_s12, %s1694_s12   ;;  %s1390_s11 = sphi %s1427_s11, %s1693_s11   ;;  %s1386_s10 = sphi %s1425_s10, %s1692_s10   ;;  %s1382_s9 = sphi %s1423_s9, %s1691_s9  }
   0x7   : > { %p39_p0 = scmp.ne.s32.totalorder %s1386_s10, %s1382_s9  ;;  %p1673_p1 = scmp.eq.s32.totalorder %s1444_s13, 0 }
   0x8   : > { %p90_p3 = scmp.eq.s32.totalorder %s1030_s14, 1  ;;  %p1031_p5 = scmp.ge.s32.totalorder %s1394_s12, 1 }
   0x9   : > { %p1453_p4 = por %p1673_p1, %p39_p0  ;;  %p97_p7 = scmp.lt.s32.totalorder %s1394_s12, 3 }
   0xa   : > { %p1458_p6 = por %p90_p3, %p39_p0  ;;  %s1396_s18 = smov [#allocation5]  }
   0xb   : > { %s1677_s15 = scalar_select %p1453_p4, 1, 0 }
   0xc   : > { %s1678_s16 = scalar_select %p1458_p6, 1, 0 }
   0xd   : > { %p1463_p8 = pnand %p1031_p5, %p97_p7  ;;  %s109_s19 = sshll.u32 %s1396_s18, 4  ;;  %s110_s19 = int_to_ptr.vmem [resolvable:$true] %s109_s19 }
   0xe   : > { %s1477_s21 = sadd.s32 1, %s1394_s12   ;;  %s26_s22 = sadd.s32 1, %s1390_s11 }
   0xf   : > { %s1679_s17 = scalar_select %p1463_p8, 1, 0 }
  0x10   : > { %p1200_p9 = pneg %p1463_p8  ;;  %s23_s23 = ssub.s32 %s1394_s12, %s1477_s21 }
  0x11   : > { %s1283_s24 = scalar_lea.vmem %s110_s19, 1792  ;;  %p1291_p5 = scmp.lt.s32.totalorder %s110_s19, %s110_s19 }
  0x12   : > { %p1472_p11 = pnand %p1200_p9, %p1673_p1  ;;  %p1284_p13 = scmp.ne.s32.totalorder %s110_s19, %s1283_s24 }
  0x13   : > { %p1292_p7 = scmp.lt.s32.totalorder %s1283_s24, %s1283_s24 }
  0x14   : > { %p1274_p12 = pneg %p1472_p11 }
  0x15   : > { %p1293_p10 = por %p1292_p7, %p1291_p5 }
  0x16   : > { %p1286_p0 = pnand %p1284_p13, %p1274_p12 }
  0x18   : > { %p1287_p3 = pneg %p1286_p0 }
  0x1a   : > { %p1294_p2 = pnand %p1293_p10, %p1287_p3 }
  0x1c   : > { %1297 = shalt.err (!%p1294_p2)
}
  0x1d   : > { %s1397_s25 = smov 64   ;;  %s1398_s26 = smov 4  }
  0x1e   : > { %1203 = dma.hbm_to_vmem [thread:$0]  (!%p1472_p11), %s1671_s1, 1792, %s110_s19, [#allocation6], %s1397_s25, %s1397_s25, %s1398_s26  }
  0x1f   : > { %p24_p9 = scmp.eq.s32.totalorder %s23_s23, 0  ;;  %p33_p12 = scmp.ne.s32.totalorder %s1390_s11, %s1386_s10 }
  0x20   : > { %p34_p10 = scmp.eq.s32.totalorder %s1394_s12, 0  ;;  %p1213_p2 = scmp.lt.s32.totalorder %s1394_s12, 2 }
  0x21   : > { %s1494_s29 = scalar_select %p24_p9, %s1390_s11, %s26_s22  }
  0x22   : > { %p35_p13 = por %p34_p10, %p33_p12  ;;  %p1681_p0 = scmp.eq.s32.totalorder %s1444_s13, 1 }
  0x23   : > { %s123_s3 = sand.u32 1, %s1390_s11   ;;  %s1078_s4 = sshll.u32 %s1394_s12, 8 }
  0x24   : > { %p1498_p3 = por %p1681_p0, %p33_p12  ;;  %s1034_s5 = sshll.u32 %s123_s3, 4 }
  0x25   : > { %s1507_s8 = scalar_lea.hbm %s1670_s0, %s1078_s4  ;;  %s127_s14 = scalar_lea.vmem [#allocation2], %s1034_s5 }
  0x26   : > { %s1682_s30 = scalar_select %p1498_p3, 1, 0 }
  0x27   : > { %s134_s18 = sshll.u32 %s127_s14, 4  ;;  %p1509_p11 = pnand %p1213_p2, %p35_p13  ;;  %s1513_s18 = int_to_ptr.vmem [resolvable:$true] %s134_s18 }
  0x28   : > { %s1515_s20 = scalar_lea.sflag [#allocation3], %s123_s3  ;;  %s1298_s22 = scalar_lea.hbm %s1507_s8, 256 }
  0x29   : > { %p1299_p5 = scmp.ne.s32.totalorder %s1507_s8, %s1298_s22  ;;  %p1300_p7 = pneg %p1509_p11 }
  0x2a   : > { %s1303_s25 = scalar_lea.hbm %s1670_s0, 512  ;;  %p1304_p10 = scmp.lt.s32.totalorder %s1507_s8, %s1670_s0 }
  0x2b   : > { %p1301_p9 = pnand %p1300_p7, %p1299_p5  ;;  %p1305_p2 = scmp.lt.s32.totalorder %s1303_s25, %s1298_s22 }
  0x2d   : > { %p1302_p12 = pneg %p1301_p9  ;;  %p1306_p13 = por %p1305_p2, %p1304_p10 }
  0x2f   : > { %p1307_p0 = pnand %p1306_p13, %p1302_p12 }
  0x31   : > { %1310 = shalt.err (!%p1307_p0)
}
  0x32   : > { %s1311_s28 = scalar_lea.vmem %s1513_s18, 256  ;;  %s1399_s3 = smov [#allocation2]  }
  0x33   : > { %p1312_p1 = scmp.ne.s32.totalorder %s1513_s18, %s1311_s28  ;;  %s1316_s4 = sshll.u32 %s1399_s3, 4  ;;  %s1317_s4 = int_to_ptr.vmem [resolvable:$false] %s1316_s4 }
  0x34   : > { %s1318_s5 = scalar_lea.vmem %s1317_s4, 512  ;;  %p1319_p9 = scmp.lt.s32.totalorder %s1513_s18, %s1317_s4 }
  0x35   : > { %p1314_p6 = pnand %p1312_p1, %p1300_p7  ;;  %p1320_p3 = scmp.lt.s32.totalorder %s1318_s5, %s1311_s28 }
  0x37   : > { %p1315_p5 = pneg %p1314_p6  ;;  %p1321_p4 = por %p1320_p3, %p1319_p9 }
  0x39   : > { %p1322_p8 = pnand %p1321_p4, %p1315_p5 }
  0x3b   : > { %1325 = shalt.err (!%p1322_p8)
}
  0x3c   : > { %s1400_s6 = smov 128   ;;  %s1401_s7 = smov 8  }
  0x3d   : > { %1207 = dma.hbm_to_vmem [thread:$0]  (!%p1509_p11), %s1507_s8, 256, %s1513_s18, %s1515_s20, %s1400_s6, %s1400_s6, %s1401_s7  }
  0x3e   : > { %p1684_p1 = scmp.ne.s32.totalorder %s1679_s17, 0 }
  0x3f   : > { %s1539_s14 = sand.u32 (!%p1684_p1), 1, %s1386_s10   ;;  %p1685_p4 = scmp.ne.s32.totalorder (!%p1684_p1), %s1677_s15, 0 }
  0x40   : > { %146 = sbr.rel (%p1684_p1) target bundleno = 942 (0x3ae), region = 28  ;;  %s1038_s22 = sshll.u32 (!%p1684_p1), %s1539_s14, 4 }
  0x41   : > { %s149_s23 = scalar_lea.sflag (!%p1684_p1), [#allocation3], %s1539_s14  ;;  %s152_s24 = scalar_lea.vmem (!%p1684_p1), [#allocation2], %s1038_s22 }
  0x45   : > { %1369 = dma.done.wait (%p1685_p4), %s149_s23, 256  }
  0x46   : > { %1371 = vsyncadd (%p1685_p4), %s149_s23, 4294967040  ;;  %p1686_p6 = scmp.eq.s32.totalorder %s1444_s13, 0 }
  0x48   : > { %1373 = dma.done.wait (%p1686_p6), [#allocation6], 1792   ;;  %p1687_p8 = pmov %p1686_p6 }
  0x49   : > { %v1402_v0 = vmov 0.0   ;;  %vm1403_vm0 = vmmov 0   ;;  %v1258_v1 = vld [vmem:[#allocation5 + $0x8] sm:$0xff]   ;;  %v178_v2 = vld [vmem:[%s152_s24] sm:$0xff]  ;;  %vm198_vm1 = vcmask 130048   ;;  %v1261_v15 = vld [vmem:[#allocation5 + $0x18] sm:$0xff]  }
  0x4a   : > { %1375 = vsyncadd (%p1687_p8), [#allocation6], 4294965504  ;;  %1108 = vmatprep.subr.bf16.mxu0 %v1402_v0  ;;  %1110 = vmatprep.mubr.msk.bf16.mxu0 %vm1403_vm0, %v1402_v0  ;;  %v179_v3 = vld [vmem:[%s152_s24 + $0x8] sm:$0xff]  ;;  %vm180_vm2 = vcmp.ne.f32.partialorder %v178_v2, 0.0  ;;  %v1404_v7 = vmov 1.0|1.0  }
  0x4b   : > { %1114 = vmatprep.subr.bf16.mxu1 %v1402_v0  ;;  %1116 = vmatprep.mubr.msk.bf16.mxu1 %vm1403_vm0, %v1402_v0  ;;  %vm181_vm3 = vcmp.ne.f32.partialorder %v179_v3, 0.0  ;;  %v1041_v4 = vsel %vm180_vm2, 1.0, %v1402_v0  ;;  %v1260_v8 = vld [vmem:[#allocation5] sm:$0xff]   ;;  %v1259_v14 = vld [vmem:[#allocation5 + $0x10] sm:$0xff]   ;;  %v1262_v16 = vld [vmem:[#allocation5 + $0x28] sm:$0xff]   ;;  %s1079_s15 = sshll.u32 %s1444_s13, 8 }
  0x4c   : > { %1109 = vmatpush3.bf16.msra.mxu0 %v1258_v1  ;;  %v1042_v5 = vsel %vm181_vm3, 1.0, %v1402_v0  ;;  %vm1048_vm4 = vmpackc.low %vm181_vm3, %vm180_vm2  ;;  %v1263_v17 = vld [vmem:[#allocation5 + $0x38] sm:$0xff]   ;;  %v1264_v18 = vld [vmem:[#allocation5 + $0x48] sm:$0xff]   ;;  %s176_s17 = scalar_lea.vmem [#allocation7], %s1038_s22  ;;  %s1624_s20 = scalar_lea.hbm %s1672_s2, %s1079_s15 }
  0x4d   : > { %1120 = vmatprep.subr.bf16.mxu0 %v1402_v0  ;;  %v186_v6 = vpack.c.bf16 %v1042_v5, %v1041_v4  ;;  %v1268_v23 = vld [vmem:[#allocation5 + $0x58] sm:$0xff]   ;;  %v1265_v33 = vld [vmem:[#allocation5 + $0x20] sm:$0xff]   ;;  %v1266_v39 = vld [vmem:[#allocation5 + $0x30] sm:$0xff]   ;;  %s947_s8 = sshll.u32 %s176_s17, 4  ;;  %s934_s13 = scalar_lea.sflag [#allocation4], %s1539_s14  ;;  %s1626_s8 = int_to_ptr.vmem [resolvable:$true] %s947_s8 }
  0x4e   : > { %v1267_v45 = vld [vmem:[#allocation5 + $0x40] sm:$0xff]   ;;  %v1269_v51 = vld [vmem:[#allocation5 + $0x50] sm:$0xff]   ;;  %v1270_v56 = vld [vmem:[#allocation5 + $0x68] sm:$0xff]   ;;  %s1326_s25 = scalar_lea.vmem %s1626_s8, 256  ;;  %p1688_p11 = scmp.ne.s32.totalorder %s1682_s30, 0 }
  0x4f   : > { %1111 = vmatmul.mubr.msk.bf16.vlgmr.msra.gmra.mxu0 %vm198_vm1, %v186_v6  ;;  %p1327_p3 = scmp.ne.s32.totalorder %s1626_s8, %s1326_s25  ;;  %s1405_s26 = smov [#allocation7]  }
  0x50   : > { %1122 = vmatprep.mubr.msk.bf16.mxu0 %vm1403_vm0, %v1402_v0  ;;  %1121 = vmatpush3.bf16.msk.msra.mxu0 %vm1048_vm4, %v1404_v7  ;;  %s1330_s27 = sshll.u32 %s1405_s26, 4  ;;  %s1331_s27 = int_to_ptr.vmem [resolvable:$false] %s1330_s27 }
  0x51   : > { %1132 = vmatprep.subr.bf16.mxu0 %v1402_v0  ;;  %p1328_p7 = pnand %p1327_p3, %p1688_p11  ;;  %s1332_s28 = scalar_lea.vmem %s1331_s27, 512 }
  0x52   : > { %p1333_p10 = scmp.lt.s32.totalorder %s1626_s8, %s1331_s27  ;;  %p1334_p2 = scmp.lt.s32.totalorder %s1332_s28, %s1326_s25 }
  0x53   : > { %p1329_p12 = pneg %p1328_p7 }
  0x54   : > { %p1335_p13 = por %p1334_p2, %p1333_p10 }
  0x56   : > { %p1336_p0 = pnand %p1335_p13, %p1329_p12 }
  0x57   : > { %1123 = vmatmul.mubr.msk.bf16.vlgmr.msra.gmra.mxu0 %vm198_vm1, %v1260_v8 }
  0x58   : > { %1134 = vmatprep.mubr.msk.bf16.mxu0 %vm1403_vm0, %v1402_v0 }
 0x10f   : > { %v236_v9 = vpop.f32.mrf.mxu0 }
 0x111   : > { %v1112_v10 = vpop.f32.mrf.mxu0 }
 0x113   : > { %v239_v11 = vpop.f32.mrf.mxu0 }
 0x114   : > { %v246_v12 = vpack.c.bf16 %v239_v11, %v236_v9 }
 0x115   : > { %v1113_v13 = vpop.f32.mrf.mxu0 }
 0x116   : > { %1115 = vmatpush3.bf16.msra.mxu1 %v246_v12 }
 0x117   : > { %1126 = vmatprep.subr.bf16.mxu1 %v1402_v0  ;;  %v1589_v19 = vpop.f32.mrf.mxu0 }
 0x119   : > { %1117 = vmatmul.mubr.msk.bf16.vlgmr.msra.gmra.mxu1 %vm198_vm1, %v1259_v14  ;;  %v1124_v20 = vpop.f32.mrf.mxu0 }
 0x11a   : > { %1127 = vmatpush3.bf16.msra.mxu1 %v1261_v15  ;;  %1128 = vmatprep.mubr.msk.bf16.mxu1 %vm1403_vm0, %v1402_v0 }
 0x11b   : > { %1138 = vmatprep.subr.bf16.mxu1 %v1402_v0  ;;  %v1591_v21 = vpop.f32.mrf.mxu0 }
 0x11d   : > { %v1125_v22 = vpop.f32.mrf.mxu0 }
 0x121   : > { %1129 = vmatmul.mubr.msk.bf16.vlgmr.msra.gmra.mxu1 %vm198_vm1, %v186_v6 }
 0x122   : > { %1139 = vmatpush3.bf16.msra.mxu1 %v1262_v16  ;;  %1140 = vmatprep.mubr.msk.bf16.mxu1 %vm1403_vm0, %v1402_v0 }
 0x123   : > { %1150 = vmatprep.subr.bf16.mxu1 %v1402_v0 }
 0x129   : > { %1141 = vmatmul.mubr.msk.bf16.vlgmr.msra.gmra.mxu1 %vm198_vm1, %v186_v6 }
 0x12a   : > { %1151 = vmatpush3.bf16.msra.mxu1 %v1263_v17  ;;  %1152 = vmatprep.mubr.msk.bf16.mxu1 %vm1403_vm0, %v1402_v0 }
 0x12b   : > { %1162 = vmatprep.subr.bf16.mxu1 %v1402_v0 }
 0x131   : > { %1153 = vmatmul.mubr.msk.bf16.vlgmr.msra.gmra.mxu1 %vm198_vm1, %v186_v6 }
 0x132   : > { %1163 = vmatpush3.bf16.msra.mxu1 %v1264_v18  ;;  %1164 = vmatprep.mubr.msk.bf16.mxu1 %vm1403_vm0, %v1402_v0 }
 0x133   : > { %1174 = vmatprep.subr.bf16.mxu1 %v1402_v0 }
 0x139   : > { %1165 = vmatmul.mubr.msk.bf16.vlgmr.msra.gmra.mxu1 %vm198_vm1, %v186_v6 }
 0x13a   : > { %1176 = vmatprep.mubr.msk.bf16.mxu1 %vm1403_vm0, %v1402_v0  ;;  %1175 = vmatpush3.bf16.msra.mxu1 %v1268_v23 }
 0x13b   : > { %1186 = vmatprep.subr.bf16.mxu1 %v1402_v0 }
 0x141   : > { %1177 = vmatmul.mubr.msk.bf16.vlgmr.msra.gmra.mxu1 %vm198_vm1, %v186_v6 }
 0x142   : > { %1188 = vmatprep.mubr.msk.bf16.mxu1 %vm1403_vm0, %v1402_v0 }
 0x1d9   : > { %v289_v24 = vpop.f32.mrf.mxu1 }
 0x1da   : > { %v339_v3 = vadd.f32 %v1589_v19, %v289_v24 }
 0x1db   : > { %v1118_v25 = vpop.f32.mrf.mxu1 }
 0x1dd   : > { %v292_v26 = vpop.f32.mrf.mxu1 }
 0x1de   : > { %v342_v6 = vadd.f32 %v1591_v21, %v292_v26  ;;  %v1271_v21 = vld [vmem:[#allocation5 + $0x60] sm:$0xff]  }
 0x1df   : > { %v1119_v27 = vpop.f32.mrf.mxu1 }
 0x1e1   : > { %v388_v28 = vpop.f32.mrf.mxu1 }
 0x1e3   : > { %v1130_v29 = vpop.f32.mrf.mxu1 }
 0x1e5   : > { %v391_v30 = vpop.f32.mrf.mxu1 }
 0x1e6   : > { %v398_v31 = vpack.c.bf16 %v391_v30, %v388_v28 }
 0x1e7   : > { %v1131_v32 = vpop.f32.mrf.mxu1 }
 0x1e8   : > { %1133 = vmatpush3.bf16.msra.mxu0 %v398_v31 }
 0x1e9   : > { %v493_v34 = vpop.f32.mrf.mxu1  ;;  %1144 = vmatprep.subr.bf16.mxu0 %v1402_v0 }
 0x1eb   : > { %1135 = vmatmul.mubr.msk.bf16.vlgmr.msra.gmra.mxu0 %vm198_vm1, %v1265_v33  ;;  %v1142_v35 = vpop.f32.mrf.mxu1 }
 0x1ec   : > { %1146 = vmatprep.mubr.msk.bf16.mxu0 %vm1403_vm0, %v1402_v0 }
 0x1ed   : > { %v496_v36 = vpop.f32.mrf.mxu1 }
 0x1ee   : > { %v503_v37 = vpack.c.bf16 %v496_v36, %v493_v34 }
 0x1ef   : > { %v1143_v38 = vpop.f32.mrf.mxu1 }
 0x1f0   : > { %1145 = vmatpush3.bf16.msra.mxu0 %v503_v37 }
 0x1f1   : > { %v598_v40 = vpop.f32.mrf.mxu1  ;;  %1156 = vmatprep.subr.bf16.mxu0 %v1402_v0 }
 0x1f3   : > { %1147 = vmatmul.mubr.msk.bf16.vlgmr.msra.gmra.mxu0 %vm198_vm1, %v1266_v39  ;;  %v1154_v41 = vpop.f32.mrf.mxu1 }
 0x1f4   : > { %1158 = vmatprep.mubr.msk.bf16.mxu0 %vm1403_vm0, %v1402_v0 }
 0x1f5   : > { %v601_v42 = vpop.f32.mrf.mxu1 }
 0x1f6   : > { %v608_v43 = vpack.c.bf16 %v601_v42, %v598_v40 }
 0x1f7   : > { %v1155_v44 = vpop.f32.mrf.mxu1 }
 0x1f8   : > { %1157 = vmatpush3.bf16.msra.mxu0 %v608_v43 }
 0x1f9   : > { %v703_v46 = vpop.f32.mrf.mxu1  ;;  %1168 = vmatprep.subr.bf16.mxu0 %v1402_v0 }
 0x1fb   : > { %1159 = vmatmul.mubr.msk.bf16.vlgmr.msra.gmra.mxu0 %vm198_vm1, %v1267_v45  ;;  %v1166_v47 = vpop.f32.mrf.mxu1 }
 0x1fc   : > { %1170 = vmatprep.mubr.msk.bf16.mxu0 %vm1403_vm0, %v1402_v0 }
 0x1fd   : > { %v706_v48 = vpop.f32.mrf.mxu1 }
 0x1fe   : > { %v713_v49 = vpack.c.bf16 %v706_v48, %v703_v46 }
 0x1ff   : > { %v1167_v50 = vpop.f32.mrf.mxu1 }
 0x200   : > { %1169 = vmatpush3.bf16.msra.mxu0 %v713_v49 }
 0x201   : > { %1180 = vmatprep.subr.bf16.mxu0 %v1402_v0  ;;  %v808_v52 = vpop.f32.mrf.mxu1 }
 0x203   : > { %1171 = vmatmul.mubr.msk.bf16.vlgmr.msra.gmra.mxu0 %vm198_vm1, %v1269_v51  ;;  %v1178_v53 = vpop.f32.mrf.mxu1 }
 0x204   : > { %1182 = vmatprep.mubr.msk.bf16.mxu0 %vm1403_vm0, %v1402_v0  ;;  %1181 = vmatpush3.bf16.msra.mxu0 %v1270_v56 }
 0x205   : > { %v811_v54 = vpop.f32.mrf.mxu1 }
 0x207   : > { %v1179_v55 = vpop.f32.mrf.mxu1 }
 0x2ab   : > { %v441_v57 = vpop.f32.mrf.mxu0 }
 0x2ac   : > { %v448_v5 = vadd.f32 %v441_v57, %v339_v3 }
 0x2ad   : > { %v1136_v58 = vpop.f32.mrf.mxu0 }
 0x2af   : > { %v444_v59 = vpop.f32.mrf.mxu0 }
 0x2b0   : > { %v449_v9 = vadd.f32 %v444_v59, %v342_v6 }
 0x2b1   : > { %v1137_v60 = vpop.f32.mrf.mxu0 }
 0x2b3   : > { %v546_v61 = vpop.f32.mrf.mxu0 }
 0x2b4   : > { %v553_v7 = vadd.f32 %v546_v61, %v448_v5 }
 0x2b5   : > { %v1148_v62 = vpop.f32.mrf.mxu0 }
 0x2b7   : > { %v549_v63 = vpop.f32.mrf.mxu0 }
 0x2b8   : > { %v554_v12 = vadd.f32 %v549_v63, %v449_v9 }
 0x2b9   : > { %v1149_v1 = vpop.f32.mrf.mxu0 }
 0x2bb   : > { %v651_v2 = vpop.f32.mrf.mxu0 }
 0x2bc   : > { %v658_v10 = vadd.f32 %v651_v2, %v553_v7 }
 0x2bd   : > { %v1160_v4 = vpop.f32.mrf.mxu0 }
 0x2bf   : > { %v654_v0 = vpop.f32.mrf.mxu0 }
 0x2c0   : > { %v659_v15 = vadd.f32 %v654_v0, %v554_v12 }
 0x2c1   : > { %v1161_v8 = vpop.f32.mrf.mxu0 }
 0x2c3   : > { %v756_v11 = vpop.f32.mrf.mxu0 }
 0x2c4   : > { %v763_v13 = vadd.f32 %v756_v11, %v658_v10 }
 0x2c5   : > { %v1172_v14 = vpop.f32.mrf.mxu0 }
 0x2c6   : > { %v815_v16 = vadd.f32 %v808_v52, %v763_v13 }
 0x2c7   : > { %v759_v17 = vpop.f32.mrf.mxu0 }
 0x2c8   : > { %v764_v18 = vadd.f32 %v759_v17, %v659_v15  ;;  %v817_v22 = vmin.f32 %v815_v16, 1.0 }
 0x2c9   : > { %v1173_v20 = vpop.f32.mrf.mxu0 }
 0x2ca   : > { %v816_v19 = vadd.f32 %v811_v54, %v764_v18  ;;  %v819_v24 = vsub.f32 1.0, %v817_v22 }
 0x2cc   : > { %v818_v23 = vmin.f32 %v816_v19, 1.0 }
 0x2ce   : > { %v820_v25 = vsub.f32 1.0, %v818_v23 }
 0x2d0   : > { %v821_v27 = vpack.c.bf16 %v820_v25, %v819_v24 }
 0x2d2   : > { %1183 = vmatmul.mubr.msk.bf16.vlgmr.msra.gmra.mxu0 %vm198_vm1, %v821_v27  ;;  %1187 = vmatpush3.bf16.msra.mxu1 %v821_v27 }
 0x2d5   : > { %1189 = vmatmul.mubr.msk.bf16.vlgmr.msra.gmra.mxu1 %vm198_vm1, %v1271_v21 }
 0x392   : > { %v871_v26 = vpop.f32.mrf.mxu0 }
 0x394   : > { %v1184_v28 = vpop.f32.mrf.mxu0 }
 0x395   : > { %v920_v29 = vpop.f32.mrf.mxu1 }
 0x396   : > { %v921_v30 = vadd.f32 %v920_v29, %v871_v26  ;;  %v874_v31 = vpop.f32.mrf.mxu0 }
 0x397   : > { %v1190_v32 = vpop.f32.mrf.mxu1 }
 0x398   : > { %v927_v33 = vmin.f32 %v921_v30, 1.0  ;;  %v1185_v34 = vpop.f32.mrf.mxu0 }
 0x399   : > { %v923_v35 = vpop.f32.mrf.mxu1 }
 0x39a   : > { %v929_v36 = vsub.f32 %v927_v33, %v819_v24  ;;  %v924_v37 = vadd.f32 %v923_v35, %v874_v31 }
 0x39b   : > { %v1191_v38 = vpop.f32.mrf.mxu1 }
 0x39c   : > { %931 = vst.msk [vmem:[%s176_s17] sm:$0xff] %vm198_vm1, %v929_v36  ;;  %v928_v39 = vmin.f32 %v924_v37, 1.0 }
 0x39e   : > { %v930_v40 = vsub.f32 %v928_v39, %v820_v25 }
 0x3a0   : > { %932 = vst.msk [vmem:[%s176_s17 + $0x8] sm:$0xff] %vm198_vm1, %v930_v40 }
 0x3a1   : > { %1339 = shalt.err (!%p1336_p0)
}
 0x3a2   : > { %s1340_s3 = scalar_lea.hbm %s1624_s20, 256  ;;  %s1344_s6 = scalar_lea.hbm %s1672_s2, 512 }
 0x3a3   : > { %p1341_p5 = scmp.ne.s32.totalorder %s1624_s20, %s1340_s3  ;;  %p1345_p4 = scmp.lt.s32.totalorder %s1624_s20, %s1672_s2 }
 0x3a4   : > { %p1346_p6 = scmp.lt.s32.totalorder %s1344_s6, %s1340_s3 }
 0x3a5   : > { %p1342_p9 = pnand %p1341_p5, %p1688_p11 }
 0x3a6   : > { %p1347_p8 = por %p1346_p6, %p1345_p4 }
 0x3a7   : > { %p1343_p1 = pneg %p1342_p9 }
 0x3a9   : > { %p1348_p3 = pnand %p1347_p8, %p1343_p1 }
 0x3ab   : > { %1351 = shalt.err (!%p1348_p3)
}
 0x3ac   : > { %s1406_s23 = smov 128   ;;  %s1407_s24 = smov 8  }
 0x3ad   : > { %1198 = dma.vmem_to_hbm [thread:$0]  (%p1688_p11), %s1626_s8, 256, %s1624_s20, %s934_s13, %s1406_s23, %s1406_s23, %s1407_s24  }
 0x3ae PF: > { %s962_s15 = sand.u32 1, %s1382_s9   ;;  %p1689_p7 = scmp.ne.s32.totalorder %s1678_s16, 0 }
 0x3af   : > { %p1690_p12 = scmp.ge.s32.totalorder %s1394_s12, 2  ;;  %s963_s17 = scalar_lea.sflag [#allocation4], %s962_s15 }
 0x3b1   : > { %p1209_p10 = pnand %p1690_p12, %p1689_p7 }
 0x3b3   : > { %p1210_p2 = pneg %p1209_p10 }
 0x3b5   : > { %1377 = dma.done.wait (%p1210_p2), %s963_s17, 256  }
 0x3b6   : > { %1379 = vsyncadd (%p1210_p2), %s963_s17, 4294967040  ;;  %p16_p13 = scmp.ge.s32.totalorder %s1477_s21, 4   ;;  %s1691_s9 = smov %s1386_s10 }
 0x3b7   : > { %s1692_s10 = smov %s1390_s11  ;;  %s1693_s11 = smov %s1494_s29 }
 0x3b8   : > { %s1694_s12 = smov %s1477_s21  ;;  %18 = sbr.rel (!%p16_p13) target bundleno = 6 (0x6), region = 90 }
 0x3bd   :  { %968 = vsyncpa [#allocation3], 1 }
 0x3be   :  { %970 = vsyncpa [#allocation3 + $0x1], 1 }
 0x3bf   :  { %971 = vsyncpa [#allocation6], 1 }
 0x3c0   :  { %972 = vsyncpa [#allocation4], 1 }
 0x3c1   :  { %974 = vsyncpa [#allocation4 + $0x1], 1 }

</bundles_post_ra>
